<compile_context>
chip_gen: v5e
topology: v5e:2x2
jax: 0.10.0
libtpu: 0.0.40
codegen_flags: <defaults>
</compile_context>

<pallas_src>
import functools

import jax
import jax.numpy as jnp
from jax.experimental import pallas as pl
from jax.experimental.pallas import tpu as pltpu


def _round_up(x, m):
    return (x + m - 1) // m * m


def _vmem_capacity_bytes():
    """Physical VMEM of the attached TPU; conservative fallback (v7x) off-TPU."""
    try:
        info = pltpu.get_tpu_info()
        for attr in ("vmem_capacity_bytes", "vmem_bytes", "vmem_size_bytes"):
            v = getattr(info, attr, None)
            if v:
                return int(v)
    except Exception:
        pass
    return 64 * 1024 * 1024


def _patch_embed_kernel(x_ref, w_ref, b_ref, o_ref, *, compute_dtype):
    # In-kernel cast to the MXU dtype (rides in VALU slack under the matmul),
    # f32 accumulation, bias add, store in the requested output dtype.
    x = x_ref[...].astype(compute_dtype)
    acc = jnp.dot(x, w_ref[...], preferred_element_type=jnp.float32)
    o_ref[...] = (acc + b_ref[...]).astype(o_ref.dtype)


def patch_embed(x, conv_w, conv_b, patch_size, *, compute_dtype=jnp.bfloat16,
                out_dtype=None, block_m=None):
    """x: [B, C, H, W] (NCHW), conv_w: [E, C, ph, pw], conv_b: [E].

    Returns [B, num_patches, E] in `out_dtype` (default: x.dtype). Matmul runs
    in `compute_dtype` operands with f32 accumulation (documented divergence
    from PyTorch's f32 Conv2d; pass compute_dtype=jnp.float32 for closer parity).
    """
    B, C, H, W = x.shape
    E = conv_w.shape[0]
    ph, pw = patch_size
    gh, gw = H // ph, W // pw
    num_patches = gh * gw
    M = B * num_patches
    K = C * ph * pw
    out_dtype = x.dtype if out_dtype is None else out_dtype

    # --- patch extraction: a single XLA transpose fusion (row order b-major,
    #     gi, gj matches PyTorch flatten(2).transpose(1,2)). No cast, no pad
    #     here; allow_input_fusion below lets XLA fold it into the pallas
    #     input pipeline when possible. ---
    patches = x.reshape(B, C, gh, ph, gw, pw)
    patches = patches.transpose(0, 2, 4, 1, 3, 5).reshape(M, K)   # [M, K], x.dtype

    # conv weight [E, C, ph, pw] -> [K, E]; lane-pad E only if needed (weights
    # are tiny, this pad is negligible). Standard ViT widths need no pad.
    E_pad = E if E % 128 == 0 else _round_up(E, 128)
    w2d = conv_w.reshape(E, K).T.astype(compute_dtype)            # [K, E]
    b2d = conv_b.astype(jnp.float32).reshape(1, E)
    if E_pad != E:
        w2d = jnp.pad(w2d, ((0, 0), (0, E_pad - E)))
        b2d = jnp.pad(b2d, ((0, 0), (0, E_pad - E)))

    # --- per-generation tile selection ---
    in_bytes = jnp.dtype(x.dtype).itemsize
    out_bytes = jnp.dtype(out_dtype).itemsize
    w_bytes = jnp.dtype(compute_dtype).itemsize
    vmem = _vmem_capacity_bytes()
    big_vmem = vmem >= 100 * 1024 * 1024            # v5e / v6e: 128 MiB physical
    gen_cap = 2048 if big_vmem else 1024            # v7x (64 MiB): keep tiles modest
    if block_m is not None:
        gen_cap = block_m
    # VMEM budget with headroom: double-buffered patch + output tiles, plus the
    # grid-invariant weight/bias (still allocated x2 by the default pipeline).
    budget = int(vmem * 0.6)
    fixed = 2 * (K * E_pad * w_bytes + E_pad * 4)
    per_row = 2 * (K * in_bytes + E_pad * out_bytes)
    tm_cap = max(16, (budget - fixed) // per_row)
    tm_cap = min(gen_cap, (tm_cap // 16) * 16)
    tm_cap = max(16, tm_cap)

    M16 = _round_up(M, 16)
    # At least ~8 grid steps when M allows (double-buffer overlap + both v7x
    # TensorCores); even step count so the megacore split is balanced.
    n_steps = max(pl.cdiv(M16, tm_cap), min(8, M16 // 16), 1)
    if n_steps > 1 and n_steps % 2:
        n_steps += 1
    tm = max(16, _round_up(pl.cdiv(M16, n_steps), 16))  # 16-row multiple (bf16 packing)
    grid_m = pl.cdiv(M, tm)          # ragged last block: OOB rows read garbage,
                                     # OOB writes are masked -> no M padding needed.

    cost = pl.CostEstimate(
        flops=2 * M * K * E_pad,
        transcendentals=0,
        bytes_accessed=(M * K * in_bytes + K * E_pad * w_bytes
                        + E_pad * 4 + M * E_pad * out_bytes),
    )

    kernel = functools.partial(_patch_embed_kernel, compute_dtype=compute_dtype)
    out = pl.pallas_call(
        kernel,
        out_shape=jax.ShapeDtypeStruct((M, E_pad), out_dtype),
        grid=(grid_m,),
        in_specs=[
            pl.BlockSpec((tm, K), lambda i: (i, 0)),      # stream patch rows (x.dtype)
            pl.BlockSpec((K, E_pad), lambda i: (0, 0)),   # weight: VMEM-resident
            pl.BlockSpec((1, E_pad), lambda i: (0, 0)),   # bias:   VMEM-resident
        ],
        out_specs=pl.BlockSpec((tm, E_pad), lambda i: (i, 0)),
        compiler_params=pltpu.CompilerParams(
            dimension_semantics=("parallel",),            # megacore on v7x
            vmem_limit_bytes=(96 if big_vmem else 32) * 1024 * 1024,
            allow_input_fusion=[True, False, False],      # fuse patchify transpose
        ),
        cost_estimate=cost,
    )(patches, w2d, b2d)

    if E_pad != E:                    # only for non-multiple-of-128 embed dims
        out = out[:, :E]
    # [B*num_patches, E] -> [B, num_patches, E] (free reshape: leading dim split)
    return out.reshape(B, num_patches, E)


if __name__ == "__main__":
    # Small shapes consistent with PatchEmbed(img_size=16, patch_size=4,
    # in_chans=4, embed_dim=32), batch = 2.  norm_layer=None -> Identity.
    B, C, H, W = 2, 4, 16, 16
    patch = (4, 4)
    E = 32

    key = jax.random.PRNGKey(0)
    kx, kw, kb = jax.random.split(key, 3)
    x = jax.random.normal(kx, (B, C, H, W), dtype=jnp.float32)
    conv_w = jax.random.normal(kw, (E, C, patch[0], patch[1]), dtype=jnp.float32) * 0.02
    conv_b = jax.random.normal(kb, (E,), dtype=jnp.float32) * 0.02

    fn = jax.jit(functools.partial(patch_embed, patch_size=patch))
    y = fn(x, conv_w, conv_b)
    jax.block_until_ready(y)

    # sanity: output shape must be [B, num_patches, embed_dim]
    assert y.shape == (B, (H // patch[0]) * (W // patch[1]), E), y.shape

    # cross-check against plain-JAX reference (lax conv == PyTorch Conv2d),
    # computed with the same bf16 operands / f32 accumulation as the kernel.
    ref = jax.lax.conv_general_dilated(
        x.astype(jnp.bfloat16), conv_w.astype(jnp.bfloat16),
        window_strides=patch, padding="VALID",
        dimension_numbers=("NCHW", "OIHW", "NCHW"),
        preferred_element_type=jnp.float32,
    ) + conv_b[None, :, None, None]
    ref = ref.reshape(B, E, -1).transpose(0, 2, 1).astype(x.dtype)
    assert jnp.allclose(y, ref, atol=1e-3, rtol=1e-3), float(jnp.max(jnp.abs(y - ref)))

    print("KERNEL_OK")
</pallas_src>

<mosaic_0001>
module attributes {stable_mosaic.version = 11 : i64} {
  func.func @_patch_embed_kernel(%arg0: i32, %arg1: memref<16x64xf32, #tpu.memory_space<vmem>>, %arg2: memref<64x128xbf16, #tpu.memory_space<vmem>>, %arg3: memref<1x128xf32, #tpu.memory_space<vmem>>, %arg4: memref<16x128xf32, #tpu.memory_space<vmem>>) attributes {dimension_semantics = [#tpu.dimension_semantics<parallel>], iteration_bounds = array<i64: 2>, scalar_prefetch = 0 : i64, scratch_operands = 0 : i64, tpu.core_type = #tpu.core_type<tc>, window_params = [{transform_indices = @transform_0, window_bounds = array<i64: 16, 64>}, {pipeline_mode = #tpu.pipeline_mode<synchronous>, transform_indices = @transform_1, window_bounds = array<i64: 64, 128>}, {pipeline_mode = #tpu.pipeline_mode<synchronous>, transform_indices = @transform_2, window_bounds = array<i64: 1, 128>}, {transform_indices = @transform_3, window_bounds = array<i64: 16, 128>}]} {
    %c0 = arith.constant 0 : index
    %c0_0 = arith.constant 0 : index
    %0 = vector.load %arg1[%c0, %c0_0] : memref<16x64xf32, #tpu.memory_space<vmem>>, vector<16x64xf32>
    %1 = arith.truncf %0 : vector<16x64xf32> to vector<16x64xbf16>
    %c0_1 = arith.constant 0 : index
    %c0_2 = arith.constant 0 : index
    %2 = vector.load %arg2[%c0_1, %c0_2] : memref<64x128xbf16, #tpu.memory_space<vmem>>, vector<64x128xbf16>
    %cst = arith.constant dense<0.000000e+00> : vector<16x128xf32>
    %3 = tpu.matmul %1, %2, %cst {dimension_numbers = #tpu.dot_dimension_numbers<[1], [0], [0], [1], [0, 0, 1, 1], [], []>} : vector<16x64xbf16>, vector<64x128xbf16>, vector<16x128xf32> -> vector<16x128xf32>
    %c0_3 = arith.constant 0 : index
    %c0_4 = arith.constant 0 : index
    %4 = vector.load %arg3[%c0_3, %c0_4] : memref<1x128xf32, #tpu.memory_space<vmem>>, vector<1x128xf32>
    %5 = vector.broadcast %4 : vector<1x128xf32> to vector<16x128xf32>
    %6 = arith.addf %3, %5 : vector<16x128xf32>
    %c0_5 = arith.constant 0 : index
    %c0_6 = arith.constant 0 : index
    %7 = vector.load %arg4[%c0_5, %c0_6] : memref<16x128xf32, #tpu.memory_space<vmem>>, vector<16x128xf32>
    tpu.vector_store %arg4[%c0_5, %c0_6], %6 {strides = array<i32>} : memref<16x128xf32, #tpu.memory_space<vmem>>, vector<16x128xf32>,
    return
  }
  func.func @transform_0(%arg0: i32) -> (i32, i32) {
    %c0_i32 = arith.constant 0 : i32
    %c0_i32_0 = arith.constant 0 : i32
    return %arg0, %c0_i32 : i32, i32
  }
  func.func @transform_1(%arg0: i32) -> (i32, i32) {
    %c0_i32 = arith.constant 0 : i32
    %c0_i32_0 = arith.constant 0 : i32
    %c0_i32_1 = arith.constant 0 : i32
    return %c0_i32, %c0_i32_0 : i32, i32
  }
  func.func @transform_2(%arg0: i32) -> (i32, i32) {
    %c0_i32 = arith.constant 0 : i32
    %c0_i32_0 = arith.constant 0 : i32
    %c0_i32_1 = arith.constant 0 : i32
    return %c0_i32, %c0_i32_0 : i32, i32
  }
  func.func @transform_3(%arg0: i32) -> (i32, i32) {
    %c0_i32 = arith.constant 0 : i32
    %c0_i32_0 = arith.constant 0 : i32
    return %arg0, %c0_i32 : i32, i32
  }
}

</mosaic_0001>

<bundles_post_ra>
// kernel: patch_embed.1
= control target key start
LH: loop header
LB: loop body
LE: loop exit
PB: predicated region body
PF: predicated region fallthrough
CT: control target
= control target key end

     0   :  { %8 = vsyncpa [#allocation3], 0  ;;  %s571_s0 = inlined_call_operand.vmem [shape: f32[32,64], index: 0, kind: input, shape index: {}]   ;;  %s572_s1 = inlined_call_operand.vmem [shape: bf16[64,128], index: 1, kind: input, shape index: {}]   ;;  %s573_s2 = inlined_call_operand.vmem [shape: f32[1,128], index: 2, kind: input, shape index: {}]   ;;  %s574_s3 = inlined_call_operand.hbm [shape: f32[32,128], index: 3, kind: output, shape index: {}]  }
   0x1   :  { %10 = vsyncpa [#allocation3 + $0x1], 0  ;;  %s472_s12 = smov 0   ;;  %s474_s13 = smov 0  }
   0x2   :  { %s476_s14 = smov 0   ;;  %s478_s15 = smov 0  }
   0x3 LB: > { %s493_s16 = sadd.s32 4294967295, %s448_s15   ;;  %s310_s17 = sadd.s32 4294967294, %s448_s15   ;;  %s448_s15 = sphi %s478_s15, %s580_s15   ;;  %s444_s14 = sphi %s476_s14, %s579_s14   ;;  %s440_s13 = sphi %s474_s13, %s578_s13   ;;  %s436_s12 = sphi %s472_s12, %s577_s12  }
   0x4   : > { %s497_s18 = sadd.s32 1, %s448_s15   ;;  %s91_s19 = sadd.s32 1, %s444_s14 }
   0x5   : > { %s88_s20 = ssub.s32 %s448_s15, %s497_s18  ;;  %p101_p0 = scmp.ne.s32.totalorder %s444_s14, %s440_s13 }
   0x6   : > { %p89_p1 = scmp.eq.s32.totalorder %s88_s20, 0  ;;  %p102_p2 = scmp.eq.s32.totalorder %s493_s16, 1 }
   0x7   : > { %p107_p3 = scmp.ne.s32.totalorder %s440_s13, %s436_s12  ;;  %p108_p4 = scmp.eq.s32.totalorder %s310_s17, 1 }
   0x8   : > { %s508_s21 = scalar_select %p89_p1, %s444_s14, %s91_s19  }
   0x9   : > { %p510_p5 = por %p102_p2, %p101_p0  ;;  %p514_p6 = por %p108_p4, %p107_p3 }
   0xa   : > { %p313_p7 = scmp.ge.s32.totalorder %s448_s15, 1  ;;  %p141_p8 = scmp.lt.s32.totalorder %s448_s15, 3 }
   0xc   : > { %p142_p9 = pnand %p313_p7, %p141_p8 }
   0xd   : > { %s315_s26 = sshll.u32 (!%p142_p9), %s493_s16, 1  ;;  %s162_s10 = sand.u32 (!%p142_p9), 1, %s440_s13  }
   0xe   : > { %145 = sbr.rel (%p142_p9) target bundleno = 175 (0xaf), region = 32  ;;  %p166_p10 = scmp.lt.s32.totalorder (!%p142_p9), %s315_s26, 3 }
   0xf   : > { %s314_s11 = sshll.u32 (!%p142_p9), %s162_s10, 4  ;;  %s343_s20 = sshll.u32 (!%p142_p9), %s493_s16, 4 }
  0x10   : > { %s164_s27 = scalar_lea.vmem (!%p142_p9), [#allocation2], %s314_s11  ;;  %s233_s30 = scalar_lea.sflag (!%p142_p9), [#allocation3], %s162_s10 }
  0x11   : > { %s245_s28 = sshll.u32 (!%p142_p9), %s164_s27, 4  ;;  %s246_s28 = int_to_ptr.vmem [resolvable:$true] %s245_s28 }
  0x13   : > { %v342_v0 = vld [vmem:[%s572_s1 + $0x18] sm:$0xff]  ;;  %v341_v1 = vld [vmem:[%s572_s1 + $0x10] sm:$0xff]  ;;  %s582_s26 = smov (!%p166_p10, %s315_s26), 3  ;;  %v340_v2 = vld [vmem:[%s572_s1 + $0x8] sm:$0xff]  ;;  %vm212_vm0 = vcmask 523264  }
  0x14   : > { %220 = vmatpush.bf16.msra.mxu0 %v342_v0  ;;  %s316_s29 = sshll.u32 %s582_s26, 3  ;;  %v339_v3 = vld [vmem:[%s572_s1] sm:$0xff]  ;;  %s244_s26 = scalar_lea.hbm %s574_s3, %s343_s20 }
  0x15   : > { %s169_s7 = scalar_lea.vmem %s571_s0, %s316_s29  ;;  %v385_v7 = vld [vmem:[%s573_s2] ss:$0 sm:$0xff]  ;;  %s247_s29 = sshll.u32 %s244_s26, 4  ;;  %s248_s29 = int_to_ptr.hbm [resolvable:$true] %s247_s29 }
  0x16   : > { %v173_v4 = vld [vmem:[%s169_s7] sm:$0xff]  ;;  %v174_v5 = vld [vmem:[%s169_s7 + $0x8] sm:$0xff]  ;;  %s400_s4 = sshra.s32 %s248_s29, 4  ;;  %s406_s7 = scalar_lea.hbm %s574_s3, 32  ;;  %s401_s4 = int_to_ptr.hbm [resolvable:$true] %s400_s4 }
  0x17   : > { %v175_v6 = vpack.c.bf16 %v174_v5, %v173_v4  ;;  %s402_s16 = scalar_lea.hbm %s401_s4, 16  ;;  %p407_p0 = scmp.lt.s32.totalorder %s401_s4, %s574_s3 }
  0x18   : > { %221 = vmatpush.bf16.msra.mxu0 %v341_v1  ;;  %p403_p11 = scmp.ne.s32.totalorder %s401_s4, %s402_s16  ;;  %p408_p1 = scmp.lt.s32.totalorder %s406_s7, %s402_s16 }
  0x1a   : > { %p404_p12 = pnand %p403_p11, %p510_p5  ;;  %p409_p2 = por %p408_p1, %p407_p0 }
  0x1c   : > { %222 = vmatpush.bf16.msra.mxu0 %v340_v2  ;;  %p405_p13 = pneg %p404_p12 }
  0x1e   : > { %p410_p3 = pnand %p409_p2, %p405_p13 }
  0x20   : > { %223 = vmatpush.bf16.msra.mxu0 %v339_v3 }
  0x23   : > { %333 = vmatmul.msk.bf16.vlgmr.msra.gmra.mxu0 %vm212_vm0, %v175_v6 }
  0xa0   : > { %v225_v8 = vpop.f32.mrf.mxu0 }
  0xa1   : > { %v226_v9 = vadd.f32 %v385_v7, %v225_v8 }
  0xa3   : > { %230 = vst [vmem:[%s164_s27] sm:$0xff] %v226_v9 }
  0xa8   : > { %v227_v10 = vpop.f32.mrf.mxu0 }
  0xa9   : > { %v228_v11 = vadd.f32 %v385_v7, %v227_v10 }
  0xab   : > { %231 = vst [vmem:[%s164_s27 + $0x8] sm:$0xff] %v228_v11 }
  0xac   : > { %413 = shalt.err (!%p410_p3)
}
  0xad   : > { %s450_s10 = smov 128   ;;  %s451_s11 = smov 8  }
  0xae   : > { %344 = dma.vmem_to_hbm [thread:$0]  (%p510_p5), %s246_s28, 256, %s248_s29, %s233_s30, %s450_s10, %s450_s10, %s451_s11  }
  0xaf PF: > { %p350_p4 = scmp.ge.s32.totalorder %s448_s15, 2  ;;  %s262_s17 = sand.u32 1, %s436_s12  }
  0xb0   : > { %s263_s19 = scalar_lea.sflag [#allocation3], %s262_s17 }
  0xb1   : > { %p347_p7 = pnand %p350_p4, %p514_p6 }
  0xb3   : > { %p348_p8 = pneg %p347_p7 }
  0xb5   : > { %431 = dma.done.wait (%p348_p8), %s263_s19, 256  }
  0xb6   : > { %433 = vsyncadd (%p348_p8), %s263_s19, 4294967040  ;;  %p13_p9 = scmp.ge.s32.totalorder %s497_s18, 4   ;;  %s577_s12 = smov %s440_s13 }
  0xb7   : > { %s578_s13 = smov %s444_s14  ;;  %s579_s14 = smov %s508_s21 }
  0xb8   : > { %s580_s15 = smov %s497_s18  ;;  %15 = sbr.rel (!%p13_p9) target bundleno = 3 (0x3), region = 67 }
  0xbd   :  { %269 = vsyncpa [#allocation3], 1 }
  0xbe   :  { %271 = vsyncpa [#allocation3 + $0x1], 1 }

</bundles_post_ra>
